<compile_context>
chip_gen: v7x
topology: tpu7x:2x2x1
jax: 0.10.0
libtpu: 0.0.40
codegen_flags: <defaults>
</compile_context>

<pallas_src>
import functools

import jax
import jax.numpy as jnp
from jax import lax
from jax.experimental import pallas as pl
from jax.experimental.pallas import tpu as pltpu


def _bilinear_kernel(xs_ref, img_ref, out_ref, *, H, W, C):
    # xs_ref : (2, tN)   float32, row 0 = x (width coord), row 1 = y (height),
    #                    normalized to [0, 1].
    # img_ref: (C*H, W)  float32, row index r = c*H + y.
    # out_ref: (C, tN)   float32 (transposed result; wrapper transposes back).
    tN = xs_ref.shape[1]
    CH = C * H

    xs = xs_ref[...]                                   # (2, tN)
    x = xs[0:1, :] * float(W)                          # (1, tN)
    y = xs[1:2, :] * float(H)                          # (1, tN)

    # torch .long() truncates toward zero; f32->i32 convert does the same.
    xi = x.astype(jnp.int32)
    yi = y.astype(jnp.int32)
    wx = x - xi.astype(jnp.float32)                    # (1, tN) lerp weights
    wy = y - yi.astype(jnp.float32)

    x0 = jnp.clip(xi, 0, W - 1)
    y0 = jnp.clip(yi, 0, H - 1)
    x1 = jnp.minimum(x0 + 1, W - 1)
    y1 = jnp.minimum(y0 + 1, H - 1)

    # ---- stage 1: x interpolation via weighted one-hot matmul (MXU) -------
    # gx[w, n] = (1 - wx[n]) * [w == x0[n]] + wx[n] * [w == x1[n]]
    w_iota = lax.broadcasted_iota(jnp.int32, (W, tN), 0)
    gx = jnp.where(w_iota == x0, 1.0 - wx, 0.0)
    gx = gx + jnp.where(w_iota == x1, wx, 0.0)         # (W, tN)
    # m[c*H + y, n] = sum_w img[y, w, c] * gx[w, n]
    m = jnp.dot(img_ref[...], gx,
                preferred_element_type=jnp.float32,
                precision=lax.Precision.HIGHEST)       # (CH, tN)

    # ---- stage 2: y interpolation weights (VPU) ----------------------------
    # gy[yy, n] = (1 - wy[n]) * [yy == y0[n]] + wy[n] * [yy == y1[n]]
    h_iota = lax.broadcasted_iota(jnp.int32, (H, tN), 0)
    gy = jnp.where(h_iota == y0, 1.0 - wy, 0.0)
    gy = gy + jnp.where(h_iota == y1, wy, 0.0)         # (H, tN)
    # replicate along the channel blocks: gy_full[c*H + yy, n] = gy[yy, n]
    gy_full = jnp.concatenate([gy] * C, axis=0)        # (CH, tN)
    p = m * gy_full                                    # (CH, tN)

    # ---- stage 3: sum over y inside each channel block (small MXU matmul) --
    # sel[c, r] = 1 if c*H <= r < (c+1)*H else 0   (no int div/mod needed)
    c_iota = lax.broadcasted_iota(jnp.int32, (C, CH), 0)
    r_iota = lax.broadcasted_iota(jnp.int32, (C, CH), 1)
    sel = jnp.where((r_iota >= c_iota * H) & (r_iota < (c_iota + 1) * H),
                    1.0, 0.0)                          # (C, CH)
    out_ref[...] = jnp.dot(sel, p,
                           preferred_element_type=jnp.float32,
                           precision=lax.Precision.HIGHEST)


def bilinear_sample(xs, image, *, tile_n=256):
    """Pallas equivalent of Image.forward(xs).

    xs:    (N, 2) float32 normalized coordinates in [0, 1], columns (x, y).
    image: (H, W, C) float32.
    returns (N, C) float32.
    """
    assert tile_n % 128 == 0, "tile_n must be a multiple of 128 lanes"
    H, W, C = image.shape
    N = xs.shape[0]

    # Layout plumbing (wrapper side, plain XLA):
    #   image -> (C*H, W) so rows are (channel, y) and the contraction dim is W
    #   xs    -> (2, N_pad) so coordinates / indices are lane-dense row vectors
    img_chw = jnp.transpose(image.astype(jnp.float32), (2, 0, 1)).reshape(C * H, W)
    xs_t = jnp.transpose(xs.astype(jnp.float32))       # (2, N)

    n_tiles = pl.cdiv(N, tile_n)
    n_pad = n_tiles * tile_n
    if n_pad != N:
        xs_t = jnp.pad(xs_t, ((0, 0), (0, n_pad - N)))

    kernel = functools.partial(_bilinear_kernel, H=H, W=W, C=C)

    out_t = pl.pallas_call(
        kernel,
        out_shape=jax.ShapeDtypeStruct((C, n_pad), jnp.float32),
        grid=(n_tiles,),
        in_specs=[
            # query tile: marches along N
            pl.BlockSpec((2, tile_n), lambda i: (0, i)),
            # whole image resident in VMEM across all N tiles
            pl.BlockSpec((C * H, W), lambda i: (0, 0)),
        ],
        out_specs=pl.BlockSpec((C, tile_n), lambda i: (0, i)),
        compiler_params=pltpu.CompilerParams(
            dimension_semantics=("parallel",),
            vmem_limit_bytes=32 * 1024 * 1024,
        ),
    )(xs_t, img_chw)

    return jnp.transpose(out_t)[:N]                    # (N, C)


def _reference(xs, image):
    """Pure-JAX reference mirroring the PyTorch forward exactly."""
    H, W, _ = image.shape
    scaled = xs * jnp.array([W, H], dtype=jnp.float32)
    idx = scaled.astype(jnp.int32)
    lerp = scaled - idx.astype(jnp.float32)
    x0 = jnp.clip(idx[:, 0], 0, W - 1)
    y0 = jnp.clip(idx[:, 1], 0, H - 1)
    x1 = jnp.minimum(x0 + 1, W - 1)
    y1 = jnp.minimum(y0 + 1, H - 1)
    wx = lerp[:, 0:1]
    wy = lerp[:, 1:2]
    return (
        image[y0, x0] * (1.0 - wx) * (1.0 - wy)
        + image[y0, x1] * wx * (1.0 - wy)
        + image[y1, x0] * (1.0 - wx) * wy
        + image[y1, x1] * wx * wy
    )


if __name__ == "__main__":
    key = jax.random.PRNGKey(0)
    k_img, k_xs1, k_xs2 = jax.random.split(key, 3)

    # Synthetic "image" standing in for read_image(filename): H x W x C.
    H, W, C = 16, 16, 4
    image = jax.random.uniform(k_img, (H, W, C), dtype=jnp.float32)

    # Case 1: tiny query set (single grid step; exercises lane padding).
    xs_small = jax.random.uniform(k_xs1, (8, 2), dtype=jnp.float32)
    out_small = jax.block_until_ready(bilinear_sample(xs_small, image))
    ref_small = _reference(xs_small, image)
    assert out_small.shape == (8, C)
    assert jnp.allclose(out_small, ref_small, atol=1e-5, rtol=1e-5), (
        f"max abs err {jnp.max(jnp.abs(out_small - ref_small))}"
    )

    # Case 2: multiple N tiles (3 grid steps with tile_n=128).
    xs_big = jax.random.uniform(k_xs2, (300, 2), dtype=jnp.float32)
    out_big = jax.block_until_ready(bilinear_sample(xs_big, image, tile_n=128))
    ref_big = _reference(xs_big, image)
    assert out_big.shape == (300, C)
    assert jnp.allclose(out_big, ref_big, atol=1e-5, rtol=1e-5), (
        f"max abs err {jnp.max(jnp.abs(out_big - ref_big))}"
    )

    print("KERNEL_OK")
</pallas_src>

<mosaic_0001>
module attributes {stable_mosaic.version = 11 : i64} {
  func.func @_bilinear_kernel(%arg0: i32, %arg1: memref<2x256xf32, #tpu.memory_space<vmem>>, %arg2: memref<64x16xf32, #tpu.memory_space<vmem>>, %arg3: memref<4x256xf32, #tpu.memory_space<vmem>>) attributes {dimension_semantics = [#tpu.dimension_semantics<parallel>], iteration_bounds = array<i64: 1>, scalar_prefetch = 0 : i64, scratch_operands = 0 : i64, tpu.core_type = #tpu.core_type<tc>, window_params = [{transform_indices = @transform_0, window_bounds = array<i64: 2, 256>}, {pipeline_mode = #tpu.pipeline_mode<synchronous>, transform_indices = @transform_1, window_bounds = array<i64: 64, 16>}, {transform_indices = @transform_2, window_bounds = array<i64: 4, 256>}]} {
    %c0 = arith.constant 0 : index
    %c0_0 = arith.constant 0 : index
    %0 = vector.load %arg1[%c0, %c0_0] : memref<2x256xf32, #tpu.memory_space<vmem>>, vector<2x256xf32>
    %1 = vector.extract_strided_slice %0 {offsets = [0, 0], sizes = [1, 256], strides = [1, 1]} : vector<2x256xf32> to vector<1x256xf32>
    %cst = arith.constant 1.600000e+01 : f32
    %2 = vector.broadcast %cst : f32 to vector<1x256xf32>
    %3 = arith.mulf %1, %2 : vector<1x256xf32>
    %4 = vector.extract_strided_slice %0 {offsets = [1, 0], sizes = [1, 256], strides = [1, 1]} : vector<2x256xf32> to vector<1x256xf32>
    %cst_1 = arith.constant 1.600000e+01 : f32
    %5 = vector.broadcast %cst_1 : f32 to vector<1x256xf32>
    %6 = arith.mulf %4, %5 : vector<1x256xf32>
    %7 = arith.fptosi %3 : vector<1x256xf32> to vector<1x256xi32>
    %8 = arith.fptosi %6 : vector<1x256xf32> to vector<1x256xi32>
    %9 = arith.sitofp %7 : vector<1x256xi32> to vector<1x256xf32>
    %10 = arith.subf %3, %9 : vector<1x256xf32>
    %11 = arith.sitofp %8 : vector<1x256xi32> to vector<1x256xf32>
    %12 = arith.subf %6, %11 : vector<1x256xf32>
    %c0_i32 = arith.constant 0 : i32
    %c15_i32 = arith.constant 15 : i32
    %13 = vector.broadcast %c0_i32 : i32 to vector<1x256xi32>
    %14 = arith.maxsi %13, %7 : vector<1x256xi32>
    %15 = vector.broadcast %c15_i32 : i32 to vector<1x256xi32>
    %16 = arith.minsi %15, %14 : vector<1x256xi32>
    %c0_i32_2 = arith.constant 0 : i32
    %c15_i32_3 = arith.constant 15 : i32
    %17 = vector.broadcast %c0_i32_2 : i32 to vector<1x256xi32>
    %18 = arith.maxsi %17, %8 : vector<1x256xi32>
    %19 = vector.broadcast %c15_i32_3 : i32 to vector<1x256xi32>
    %20 = arith.minsi %19, %18 : vector<1x256xi32>
    %c1_i32 = arith.constant 1 : i32
    %21 = vector.broadcast %c1_i32 : i32 to vector<1x256xi32>
    %22 = arith.addi %16, %21 : vector<1x256xi32>
    %c15_i32_4 = arith.constant 15 : i32
    %23 = vector.broadcast %c15_i32_4 : i32 to vector<1x256xi32>
    %24 = arith.minsi %22, %23 : vector<1x256xi32>
    %c1_i32_5 = arith.constant 1 : i32
    %25 = vector.broadcast %c1_i32_5 : i32 to vector<1x256xi32>
    %26 = arith.addi %20, %25 : vector<1x256xi32>
    %c15_i32_6 = arith.constant 15 : i32
    %27 = vector.broadcast %c15_i32_6 : i32 to vector<1x256xi32>
    %28 = arith.minsi %26, %27 : vector<1x256xi32>
    %29 = tpu.iota {dimensions = array<i32: 0>} : vector<16x256xi32>
    %30 = vector.broadcast %16 : vector<1x256xi32> to vector<16x256xi32>
    %31 = arith.cmpi eq, %29, %30 : vector<16x256xi32>
    %cst_7 = arith.constant 1.000000e+00 : f32
    %32 = vector.broadcast %cst_7 : f32 to vector<1x256xf32>
    %33 = arith.subf %32, %10 : vector<1x256xf32>
    %cst_8 = arith.constant 0.000000e+00 : f32
    %34 = vector.shape_cast %33 : vector<1x256xf32> to vector<1x256xf32>
    %35 = vector.broadcast %34 : vector<1x256xf32> to vector<16x256xf32>
    %36 = vector.broadcast %cst_8 : f32 to vector<16x256xf32>
    %37 = arith.select %31, %35, %36 : vector<16x256xi1>, vector<16x256xf32>
    %38 = vector.broadcast %24 : vector<1x256xi32> to vector<16x256xi32>
    %39 = arith.cmpi eq, %29, %38 : vector<16x256xi32>
    %cst_9 = arith.constant 0.000000e+00 : f32
    %40 = vector.shape_cast %10 : vector<1x256xf32> to vector<1x256xf32>
    %41 = vector.broadcast %40 : vector<1x256xf32> to vector<16x256xf32>
    %42 = vector.broadcast %cst_9 : f32 to vector<16x256xf32>
    %43 = arith.select %39, %41, %42 : vector<16x256xi1>, vector<16x256xf32>
    %44 = arith.addf %37, %43 : vector<16x256xf32>
    %c0_10 = arith.constant 0 : index
    %c0_11 = arith.constant 0 : index
    %45 = vector.load %arg2[%c0_10, %c0_11] : memref<64x16xf32, #tpu.memory_space<vmem>>, vector<64x16xf32>
    %cst_12 = arith.constant dense<0.000000e+00> : vector<64x256xf32>
    %46 = tpu.matmul %45, %44, %cst_12 {dimension_numbers = #tpu.dot_dimension_numbers<[1], [0], [0], [1], [0, 0, 1, 1], [], []>, precision = #tpu.contract_precision<fp32>} : vector<64x16xf32>, vector<16x256xf32>, vector<64x256xf32> -> vector<64x256xf32>
    %47 = tpu.iota {dimensions = array<i32: 0>} : vector<16x256xi32>
    %48 = vector.broadcast %20 : vector<1x256xi32> to vector<16x256xi32>
    %49 = arith.cmpi eq, %47, %48 : vector<16x256xi32>
    %cst_13 = arith.constant 1.000000e+00 : f32
    %50 = vector.broadcast %cst_13 : f32 to vector<1x256xf32>
    %51 = arith.subf %50, %12 : vector<1x256xf32>
    %cst_14 = arith.constant 0.000000e+00 : f32
    %52 = vector.shape_cast %51 : vector<1x256xf32> to vector<1x256xf32>
    %53 = vector.broadcast %52 : vector<1x256xf32> to vector<16x256xf32>
    %54 = vector.broadcast %cst_14 : f32 to vector<16x256xf32>
    %55 = arith.select %49, %53, %54 : vector<16x256xi1>, vector<16x256xf32>
    %56 = vector.broadcast %28 : vector<1x256xi32> to vector<16x256xi32>
    %57 = arith.cmpi eq, %47, %56 : vector<16x256xi32>
    %cst_15 = arith.constant 0.000000e+00 : f32
    %58 = vector.shape_cast %12 : vector<1x256xf32> to vector<1x256xf32>
    %59 = vector.broadcast %58 : vector<1x256xf32> to vector<16x256xf32>
    %60 = vector.broadcast %cst_15 : f32 to vector<16x256xf32>
    %61 = arith.select %57, %59, %60 : vector<16x256xi1>, vector<16x256xf32>
    %62 = arith.addf %55, %61 : vector<16x256xf32>
    %63 = tpu.concatenate %62, %62, %62, %62 in 0 : vector<16x256xf32>, vector<16x256xf32>, vector<16x256xf32>, vector<16x256xf32> -> vector<64x256xf32>
    %64 = arith.mulf %46, %63 : vector<64x256xf32>
    %65 = tpu.iota {dimensions = array<i32: 0>} : vector<4x64xi32>
    %66 = tpu.iota {dimensions = array<i32: 1>} : vector<4x64xi32>
    %c16_i32 = arith.constant 16 : i32
    %67 = vector.broadcast %c16_i32 : i32 to vector<4x64xi32>
    %68 = arith.muli %65, %67 : vector<4x64xi32>
    %69 = arith.cmpi sge, %66, %68 : vector<4x64xi32>
    %c1_i32_16 = arith.constant 1 : i32
    %70 = vector.broadcast %c1_i32_16 : i32 to vector<4x64xi32>
    %71 = arith.addi %65, %70 : vector<4x64xi32>
    %c16_i32_17 = arith.constant 16 : i32
    %72 = vector.broadcast %c16_i32_17 : i32 to vector<4x64xi32>
    %73 = arith.muli %71, %72 : vector<4x64xi32>
    %74 = arith.cmpi slt, %66, %73 : vector<4x64xi32>
    %75 = arith.andi %69, %74 : vector<4x64xi1>
    %cst_18 = arith.constant 1.000000e+00 : f32
    %cst_19 = arith.constant 0.000000e+00 : f32
    %76 = vector.broadcast %cst_18 : f32 to vector<4x64xf32>
    %77 = vector.broadcast %cst_19 : f32 to vector<4x64xf32>
    %78 = arith.select %75, %76, %77 : vector<4x64xi1>, vector<4x64xf32>
    %cst_20 = arith.constant dense<0.000000e+00> : vector<4x256xf32>
    %79 = tpu.matmul %78, %64, %cst_20 {dimension_numbers = #tpu.dot_dimension_numbers<[1], [0], [0], [1], [0, 0, 1, 1], [], []>, precision = #tpu.contract_precision<fp32>} : vector<4x64xf32>, vector<64x256xf32>, vector<4x256xf32> -> vector<4x256xf32>
    %c0_21 = arith.constant 0 : index
    %c0_22 = arith.constant 0 : index
    %80 = vector.load %arg3[%c0_21, %c0_22] : memref<4x256xf32, #tpu.memory_space<vmem>>, vector<4x256xf32>
    tpu.vector_store %arg3[%c0_21, %c0_22], %79 {strides = array<i32>} : memref<4x256xf32, #tpu.memory_space<vmem>>, vector<4x256xf32>,
    return
  }
  func.func @transform_0(%arg0: i32) -> (i32, i32) {
    %c0_i32 = arith.constant 0 : i32
    %c0_i32_0 = arith.constant 0 : i32
    return %c0_i32, %arg0 : i32, i32
  }
  func.func @transform_1(%arg0: i32) -> (i32, i32) {
    %c0_i32 = arith.constant 0 : i32
    %c0_i32_0 = arith.constant 0 : i32
    %c0_i32_1 = arith.constant 0 : i32
    return %c0_i32, %c0_i32_0 : i32, i32
  }
  func.func @transform_2(%arg0: i32) -> (i32, i32) {
    %c0_i32 = arith.constant 0 : i32
    %c0_i32_0 = arith.constant 0 : i32
    return %c0_i32, %arg0 : i32, i32
  }
}

</mosaic_0001>

<bundles_post_ra>
// kernel: tpu_custom_call.1
= control target key start
LH: loop header
LB: loop body
LE: loop exit
PB: predicated region body
PF: predicated region fallthrough
CT: control target
= control target key end

     0   :  { %v24_v1 = vlaneseq  ;;  %v2594_v3 = vmov 0.0   ;;  %s2590_s0 = inlined_call_operand.vmem [shape: f32[2,256], index: 0, kind: input, shape index: {}]   ;;  %s2591_s1 = inlined_call_operand.vmem [shape: f32[64,16], index: 1, kind: input, shape index: {}]   ;;  %s2592_s2 = inlined_call_operand.hbm [shape: f32[4,256], index: 2, kind: output, shape index: {}]  }
   0x1   :  { %v12_v0 = vld [vmem:[%s2590_s0] sm:$0xf]  ;;  %392 = vmatprep.mubr.f32.mxu0 %v2594_v3  ;;  %219 = vmatprep.mubr.f32.mxu1 %v2594_v3 }
   0x2   :  { %v13_v2 = vmul.f32 16.0, %v12_v0  ;;  %v2034_v5 = vshrl.u32 %v24_v1, 7 }
   0x4   :  { %v1983_v4 = vtrunc.f32 %v13_v2 }
   0x5   :  { %7 = vsyncpa [#allocation3], 0  ;;  %v118_v6 = vld [vmem:[%s2591_s1] sm:$0xff]  ;;  %vm126_vm0 = vcmask 130048   ;;  %v33_v9 = vsub.s32 2, %v2034_v5  ;;  %v29_v12 = vsub.s32 0, %v2034_v5 }
   0x6   :  { %v1984_v7 = vcvt.f32.s32 %v1983_v4  ;;  %v128_v10 = vsel %vm126_vm0, %v118_v6, 0  ;;  %v119_v14 = vld [vmem:[%s2591_s1 + $0x8] sm:$0xff]  ;;  %v2050_v16 = vadd.s32 8, %v2034_v5  ;;  %v120_v32 = vld [vmem:[%s2591_s1 + $0x10] sm:$0xff]  ;;  %v121_v47 = vld [vmem:[%s2591_s1 + $0x18] sm:$0xff] }
   0x7   :  { %v2052_v17 = vand.u32 4294901760, %v128_v10  ;;  %v131_v24 = vsel %vm126_vm0, %v119_v14, 0  ;;  %v134_v40 = vsel %vm126_vm0, %v120_v32, 0  ;;  %v122_v54 = vld [vmem:[%s2591_s1 + $0x20] sm:$0xff]  ;;  %v137_v58 = vsel %vm126_vm0, %v121_v47, 0 }
   0x8   :  { %v15_v8 = vcvt.s32.f32 %v1984_v7  ;;  %vm17_vm1 = vcmp.gt.s32.totalorder %v1984_v7, 0  ;;  %v2079_v39 = vand.u32 4294901760, %v131_v24  ;;  %v2093_v57 = vand.u32 4294901760, %v134_v40 }
   0x9   :  { %v18_v11 = vsel %vm17_vm1, %v1984_v7, 0  ;;  %v2062_v23 = vsub.f32 %v128_v10, %v2052_v17  ;;  %v140_v4 = vsel %vm126_vm0, %v122_v54, 0  ;;  %v2119_v14 = vand.u32 4294901760, %v137_v58 }
   0xa   :  { %v2042_v13 = vsub.f32 %v13_v2, %v15_v8  ;;  %vm19_vm2 = vcmp.lt.s32.totalorder %v18_v11, 15  ;;  %v2097_v61 = vsub.f32 %v131_v24, %v2079_v39  ;;  %v2103_v2 = vsub.f32 %v134_v40, %v2093_v57 }
   0xb   :  { %v2047_v15 = vsel %vm19_vm2, %v18_v11, 15  ;;  %v222_v44 = vand.u32 4294901760, %v2062_v23 }
   0xc   :  { %v21_v18 = vadd.s32 1, %v2047_v15  ;;  %v34_v19 = vrot.slane %v2047_v15, %v33_v9  ;;  %v2057_v20 = vsub.f32 1.0, %v2042_v13  ;;  %v99_v21 = vrot.slane %v2042_v13, %v33_v9 }
   0xd   :  { %v30_v22 = vrot.slane %v2047_v15, %v29_v12  ;;  %v95_v27 = vrot.slane %v2042_v13, %v29_v12  ;;  %v223_v62 = vsub.f32 %v2062_v23, %v222_v44 }
   0xe   :  { %vm22_vm3 = vcmp.lt.s32.totalorder %v21_v18, 15  ;;  %v42_v25 = vrot.slane %v34_v19, %v29_v12  ;;  %v56_v26 = vrot.slane %v2057_v20, %v33_v9  ;;  %v109_v29 = vrot.slane %v99_v21, %v29_v12 }
   0xf   :  { %v2067_v28 = vsel %vm22_vm3, %v21_v18, 15  ;;  %v38_v30 = vrot.slane %v30_v22, %v29_v12  ;;  %v52_v31 = vrot.slane %v2057_v20, %v29_v12  ;;  %v105_v38 = vrot.slane %v95_v27, %v29_v12 }
  0x10   :  { %vm44_vm4 = vcmp.eq.s32.totalorder %v2034_v5, %v42_v25  ;;  %vm46_vm5 = vcmp.eq.s32.totalorder %v2050_v16, %v42_v25  ;;  %v66_v33 = vrot.slane %v56_v26, %v29_v12  ;;  %v78_v34 = vrot.slane %v2067_v28, %v33_v9 }
  0x11   :  { %vm43_vm6 = vcmp.eq.s32.totalorder %v2034_v5, %v38_v30  ;;  %vm45_vm7 = vcmp.eq.s32.totalorder %v2050_v16, %v38_v30  ;;  %v62_v35 = vrot.slane %v52_v31, %v29_v12  ;;  %v74_v36 = vrot.slane %v2067_v28, %v29_v12 }
  0x12   :  { %v86_v37 = vrot.slane %v78_v34, %v29_v12  ;;  %v68_v41 = vsel %vm44_vm4, %v66_v33, 0.0  ;;  %v70_v42 = vsel %vm46_vm5, %v66_v33, 0.0  ;;  %v233_v9 = vand.u32 4294901760, %v2097_v61 }
  0x13   :  { %v82_v43 = vrot.slane %v74_v36, %v29_v12  ;;  %v67_v45 = vsel %vm43_vm6, %v62_v35, 0.0  ;;  %v69_v46 = vsel %vm45_vm7, %v62_v35, 0.0  ;;  %v224_v21 = vand.u32 4294901760, %v223_v62 }
  0x14   :  { %vm88_vm8 = vcmp.eq.s32.totalorder %v2034_v5, %v86_v37  ;;  %vm90_vm9 = vcmp.eq.s32.totalorder %v2050_v16, %v86_v37  ;;  %v234_v22 = vsub.f32 %v2097_v61, %v233_v9  ;;  %v244_v30 = vand.u32 4294901760, %v2103_v2 }
  0x15   :  { %v111_v48 = vsel %vm88_vm8, %v109_v29, 0.0  ;;  %v113_v49 = vsel %vm90_vm9, %v109_v29, 0.0  ;;  %vm87_vm10 = vcmp.eq.s32.totalorder %v2034_v5, %v82_v43  ;;  %vm89_vm11 = vcmp.eq.s32.totalorder %v2050_v16, %v82_v43  ;;  %v123_v29 = vld [vmem:[%s2591_s1 + $0x28] sm:$0xff] }
  0x16   :  { %v115_v50 = vadd.f32 %v111_v48, %v68_v41  ;;  %v117_v51 = vadd.f32 %v113_v49, %v70_v42  ;;  %v110_v52 = vsel %vm87_vm10, %v105_v38, 0.0  ;;  %v112_v53 = vsel %vm89_vm11, %v105_v38, 0.0 }
  0x17   :  { %v114_v55 = vadd.f32 %v110_v52, %v67_v45  ;;  %v116_v56 = vadd.f32 %v112_v53, %v69_v46  ;;  %v2147_v33 = vsub.f32 %v137_v58, %v2119_v14  ;;  %v2149_v34 = vand.u32 4294901760, %v140_v4  ;;  %v124_v46 = vld [vmem:[%s2591_s1 + $0x30] sm:$0xff] }
  0x18   :  { %v151_v59 = vand.u32 4294901760, %v115_v50  ;;  %v155_v60 = vand.u32 4294901760, %v117_v51  ;;  %v235_v37 = vand.u32 4294901760, %v234_v22  ;;  %v245_v38 = vsub.f32 %v2103_v2, %v244_v30 }
  0x19   :  { %v153_v63 = vand.u32 4294901760, %v114_v55  ;;  %v157_v0 = vand.u32 4294901760, %v116_v56  ;;  %v143_v42 = vsel %vm126_vm0, %v123_v29, 0  ;;  %v255_v47 = vand.u32 4294901760, %v2147_v33 }
  0x1a   :  { %v2106_v6 = vsub.f32 %v115_v50, %v151_v59  ;;  %v2108_v7 = vsub.f32 %v117_v51, %v155_v60  ;;  %v2110_v8 = vpack.c.bf16 %v155_v60, %v151_v59  ;;  %v2163_v49 = vsub.f32 %v140_v4, %v2149_v34 }
  0x1b   :  { %v2113_v10 = vsub.f32 %v114_v55, %v153_v63  ;;  %v2115_v11 = vsub.f32 %v116_v56, %v157_v0  ;;  %v2117_v12 = vpack.c.bf16 %v157_v0, %v153_v63  ;;  %v2165_v50 = vand.u32 4294901760, %v143_v42  ;;  %v125_v55 = vld [vmem:[%s2591_s1 + $0x38] sm:$0xff]  ;;  %s2012_s1 = smov [#allocation2]  }
  0x1c   :  { %v310_v18 = vand.u32 4294901760, %v2106_v6  ;;  %v322_v19 = vand.u32 4294901760, %v2108_v7  ;;  %1772 = vmatprep.subr.bf16.mxu1 %v2110_v8  ;;  %v1779_v45 = vpack.c.bf16 %v2108_v7, %v2106_v6  ;;  %v246_v51 = vand.u32 4294901760, %v245_v38  ;;  %s1760_s26 = sshll.u32 %s2012_s1, 4  ;;  %s1761_s26 = int_to_ptr.vmem [resolvable:$true] %s1760_s26 }
  0x1d   :  { %v316_v24 = vand.u32 4294901760, %v2113_v10  ;;  %v328_v25 = vand.u32 4294901760, %v2115_v11  ;;  %1774 = vmatpush1.bf16.msra.mxu1 %v2117_v12  ;;  %v256_v52 = vsub.f32 %v2147_v33, %v255_v47  ;;  %v1781_v53 = vpack.c.bf16 %v2115_v11, %v2113_v10  ;;  %s1987_s27 = scalar_lea.vmem %s1761_s26, 128  ;;  %p1992_p1 = scmp.lt.s32.totalorder %s1761_s26, %s1761_s26 }
  0x1e   :  { %v311_v26 = vsub.f32 %v2106_v6, %v310_v18  ;;  %v323_v27 = vsub.f32 %v2108_v7, %v322_v19  ;;  %v146_v54 = vsel %vm126_vm0, %v124_v46, 0  ;;  %v266_v56 = vand.u32 4294901760, %v2163_v49  ;;  %p1988_p0 = scmp.ne.s32.totalorder %s1761_s26, %s1987_s27  ;;  %p1993_p2 = scmp.lt.s32.totalorder %s1987_s27, %s1987_s27 }
  0x1f   :  { %v317_v31 = vsub.f32 %v2113_v10, %v316_v24  ;;  %v329_v32 = vsub.f32 %v2115_v11, %v328_v25  ;;  %v2180_v58 = vsub.f32 %v143_v42, %v2165_v50  ;;  %v2182_v59 = vand.u32 4294901760, %v146_v54 }
  0x20   :  { %v312_v35 = vand.u32 4294901760, %v311_v26  ;;  %v324_v36 = vand.u32 4294901760, %v323_v27  ;;  %225 = vmatmul.mubr.f32.vlgmr.msra.gmra.mrb[0].mxu1 %v224_v21  ;;  %v257_v60 = vand.u32 4294901760, %v256_v52  ;;  %v267_v62 = vsub.f32 %v2163_v49, %v266_v56  ;;  %p1994_p3 = por %p1993_p2, %p1992_p1 }
  0x21   :  { %v318_v40 = vand.u32 4294901760, %v317_v31  ;;  %v330_v41 = vand.u32 4294901760, %v329_v32  ;;  %230 = vmatprep.mubr.f32.mxu1 %v2594_v3  ;;  %v149_v63 = vsel %vm126_vm0, %v125_v55, 0  ;;  %v277_v0 = vand.u32 4294901760, %v2180_v58 }
  0x22   :  { %v1775_v43 = vpack.c.bf16 %v324_v36, %v312_v35  ;;  %v2194_v4 = vsub.f32 %v146_v54, %v2182_v59  ;;  %v2196_v21 = vand.u32 4294901760, %v149_v63  ;;  %v268_v22 = vand.u32 4294901760, %v267_v62  ;;  %p1995_p4 = pnand %p1994_p3, %p1988_p0 }
  0x23   :  { %v1777_v48 = vpack.c.bf16 %v330_v41, %v318_v40  ;;  %v278_v26 = vsub.f32 %v2180_v58, %v277_v0  ;;  %v1787_v35 = vpack.c.bf16 %v322_v19, %v310_v18  ;;  %v1789_v7 = vpack.c.bf16 %v328_v25, %v316_v24 }
  0x24   :  { %1776 = vmatprep.subr.bf16.mxu0 %v1775_v43  ;;  %236 = vmatmul.mubr.f32.gmra.mrb[2].mxu1 %v235_v37  ;;  %v288_v27 = vand.u32 4294901760, %v2194_v4  ;;  %v298_v29 = vsub.f32 %v149_v63, %v2196_v21  ;;  %v987_v25 = vsub.s32 1, %v2034_v5  ;;  %vm1098_vm3 = vcmask 523264  }
  0x25   :  { %1778 = vmatpush1.bf16.msra.mxu0 %v1777_v48  ;;  %241 = vmatprep.mubr.f32.mxu1 %v2594_v3  ;;  %v279_v31 = vand.u32 4294901760, %v278_v26 }
  0x26   :  { %1780 = vmatprep.subr.bf16.mxu0 %v1779_v45  ;;  %1891 = vmatprep.subr.bf16.mxu1 %v1775_v43  ;;  %v289_v32 = vsub.f32 %v2194_v4, %v288_v27  ;;  %v299_v36 = vand.u32 4294901760, %v298_v29  ;;  %v1030_v40 = vrot.slane %v2067_v28, %v987_v25  ;;  %v1090_v43 = vand.u32 127, %v24_v1 }
  0x27   :  { %1892 = vmatpush1.bf16.msra.mxu1 %v1777_v48  ;;  %v1091_v45 = vmul.u32 16, %v2034_v5  ;;  %v1050_v48 = vrot.slane %v2042_v13, %v987_v25 }
  0x28   :  { %394 = vmatmul.mubr.f32.vlgmr.msra.gmra.mrb[0].mxu0 %v2052_v17  ;;  %247 = vmatmul.mubr.f32.gmra.mrb[4].mxu1 %v246_v51  ;;  %v290_v37 = vand.u32 4294901760, %v289_v32  ;;  %v300_v38 = vsub.f32 %v298_v29, %v299_v36 }
  0x29   :  { %1782 = vmatpush1.bf16.msra.mxu0 %v1781_v53  ;;  %399 = vmatprep.mubr.f32.mxu0 %v2594_v3  ;;  %vm1092_vm12 = vcmp.ge.s32.totalorder %v1090_v43, %v1091_v45 }
  0x2a   :  { %1784 = vmatprep.subr.bf16.mxu0 %v2110_v8  ;;  %252 = vmatprep.mubr.f32.mxu1 %v2594_v3  ;;  %v301_v6 = vand.u32 4294901760, %v300_v38 }
  0x2c   :  { %401 = vmatmul.mubr.f32.gmra.mrb[2].mxu0 %v2079_v39  ;;  %258 = vmatmul.mubr.f32.gmra.mrb[6].mxu1 %v257_v60 }
  0x2d   :  { %406 = vmatprep.mubr.f32.mxu0 %v2594_v3  ;;  %263 = vmatprep.mubr.f32.mxu1 %v2594_v3 }
  0x30   :  { %408 = vmatmul.mubr.f32.gmra.mrb[4].mxu0 %v2093_v57  ;;  %269 = vmatmul.mubr.f32.gmra.mrb[8].mxu1 %v268_v22 }
  0x31   :  { %521 = vmatprep.mubr.f32.mxu0 %v2594_v3  ;;  %274 = vmatprep.mubr.f32.mxu1 %v2594_v3 }
  0x34   :  { %524 = vmatmul.mubr.f32.vlgmr.msra.gmra.mrb[0].mxu0 %v2062_v23  ;;  %280 = vmatmul.mubr.f32.gmra.mrb[10].mxu1 %v279_v31 }
  0x35   :  { %1786 = vmatpush1.bf16.msra.mxu0 %v2117_v12  ;;  %529 = vmatprep.mubr.f32.mxu0 %v2594_v3 }
  0x36   :  { %1788 = vmatprep.subr.bf16.mxu0 %v1787_v35  ;;  %285 = vmatprep.mubr.f32.mxu1 %v2594_v3 }
  0x38   :  { %532 = vmatmul.mubr.f32.gmra.mrb[2].mxu0 %v2097_v61  ;;  %291 = vmatmul.mubr.f32.gmra.mrb[12].mxu1 %v290_v37 }
  0x39   :  { %537 = vmatprep.mubr.f32.mxu0 %v2594_v3  ;;  %296 = vmatprep.mubr.f32.mxu1 %v2594_v3 }
  0x3c   :  { %540 = vmatmul.mubr.f32.gmra.mrb[4].mxu0 %v2103_v2  ;;  %302 = vmatmul.mubr.f32.gmra.mrb[14].mxu1 %v301_v6 }
  0x3d   :  { %545 = vmatprep.mubr.f32.mxu0 %v2594_v3  ;;  %413 = vmatprep.mubr.f32.mxu1 %v2594_v3 }
  0x40   :  { %548 = vmatmul.mubr.f32.gmra.mrb[6].mxu0 %v2147_v33  ;;  %415 = vmatmul.mubr.f32.vlgmr.msra.gmra.mrb[6].mxu1 %v2119_v14  ;;  %v1093_v33 = vadd.s32 1, %v2034_v5 }
  0x41   :  { %553 = vmatprep.mubr.f32.mxu0 %v2594_v3  ;;  %420 = vmatprep.mubr.f32.mxu1 %v2594_v3 }
  0x42   :  { %v1094_v46 = vmul.u32 16, %v1093_v33 }
  0x44   :  { %556 = vmatmul.mubr.f32.gmra.mrb[8].mxu0 %v2163_v49  ;;  %422 = vmatmul.mubr.f32.gmra.mrb[8].mxu1 %v2149_v34  ;;  %vm1095_vm13 = vcmp.lt.s32.totalorder %v1090_v43, %v1094_v46 }
  0x45   :  { %561 = vmatprep.mubr.f32.mxu0 %v2594_v3  ;;  %427 = vmatprep.mubr.f32.mxu1 %v2594_v3  ;;  %vm1096_vm0 = vmand %vm1092_vm12, %vm1095_vm13 }
  0x48   :  { %564 = vmatmul.mubr.f32.gmra.mrb[10].mxu0 %v2180_v58  ;;  %429 = vmatmul.mubr.f32.gmra.mrb[10].mxu1 %v2165_v50 }
  0x49   :  { %569 = vmatprep.mubr.f32.mxu0 %v2594_v3  ;;  %434 = vmatprep.mubr.f32.mxu1 %v2594_v3 }
  0x4c   :  { %572 = vmatmul.mubr.f32.gmra.mrb[12].mxu0 %v2194_v4  ;;  %436 = vmatmul.mubr.f32.gmra.mrb[12].mxu1 %v2182_v59 }
  0x4d   :  { %577 = vmatprep.mubr.f32.mxu0 %v2594_v3  ;;  %441 = vmatprep.mubr.f32.mxu1 %v2594_v3 }
  0x50   :  { %580 = vmatmul.mubr.f32.gmra.mrb[14].mxu0 %v298_v29  ;;  %443 = vmatmul.mubr.f32.gmra.mrb[14].mxu1 %v2196_v21 }
  0x51   :  { %654 = vmatprep.mubr.f32.mxu0 %v2594_v3  ;;  %1182 = vmatprep.mubr.f32.mxu1 %v2594_v3 }
  0x54   :  { %658 = vmatmul.mubr.f32.vlgmr.msra.gmra.mrb[0].mxu0 %v222_v44 }
  0x55   :  { %1790 = vmatpush1.bf16.msra.mxu0 %v1789_v7  ;;  %663 = vmatprep.mubr.f32.mxu0 %v2594_v3 }
  0x56   :  { %1792 = vmatprep.subr.bf16.mxu0 %v2110_v8 }
  0x58   :  { %667 = vmatmul.mubr.f32.gmra.mrb[2].mxu0 %v233_v9 }
  0x59   :  { %672 = vmatprep.mubr.f32.mxu0 %v2594_v3 }
  0x5c   :  { %676 = vmatmul.mubr.f32.gmra.mrb[4].mxu0 %v244_v30  ;;  %v991_v30 = vsub.s32 3, %v2034_v5 }
  0x5d   :  { %681 = vmatprep.mubr.f32.mxu0 %v2594_v3 }
  0x5e   :  { %v992_v41 = vrot.slane %v2047_v15, %v991_v30  ;;  %v1034_v42 = vrot.slane %v2067_v28, %v991_v30  ;;  %v1012_v51 = vrot.slane %v2057_v20, %v991_v30  ;;  %v1054_v52 = vrot.slane %v2042_v13, %v991_v30 }
  0x5f   :  { %v1060_v28 = vrot.slane %v1050_v48, %v987_v25  ;;  %v2347_v13 = vsel %vm1096_vm0, 1.0, %v2594_v3 }
  0x60   :  { %685 = vmatmul.mubr.f32.gmra.mrb[6].mxu0 %v255_v47  ;;  %v1008_v47 = vrot.slane %v2057_v20, %v987_v25  ;;  %v1000_v53 = vrot.slane %v992_v41, %v987_v25  ;;  %v1042_v54 = vrot.slane %v1034_v42, %v987_v25  ;;  %v1022_v1 = vrot.slane %v1012_v51, %v987_v25 }
  0x61   :  { %690 = vmatprep.mubr.f32.mxu0 %v2594_v3  ;;  %v1064_v55 = vrot.slane %v1054_v52, %v987_v25 }
  0x62   :  { %vm1002_vm1 = vcmp.eq.s32.totalorder %v2034_v5, %v1000_v53  ;;  %vm1044_vm2 = vcmp.eq.s32.totalorder %v2034_v5, %v1042_v54  ;;  %vm1004_vm6 = vcmp.eq.s32.totalorder %v2050_v16, %v1000_v53  ;;  %vm1046_vm7 = vcmp.eq.s32.totalorder %v2050_v16, %v1042_v54 }
  0x63   :  { %v1024_v58 = vsel %vm1002_vm1, %v1022_v1, 0.0  ;;  %v1026_v26 = vsel %vm1004_vm6, %v1022_v1, 0.0 }
  0x64   :  { %694 = vmatmul.mubr.f32.gmra.mrb[8].mxu0 %v266_v56 }
  0x65   :  { %699 = vmatprep.mubr.f32.mxu0 %v2594_v3 }
  0x68   :  { %703 = vmatmul.mubr.f32.gmra.mrb[10].mxu0 %v277_v0 }
  0x69   :  { %708 = vmatprep.mubr.f32.mxu0 %v2594_v3 }
  0x6c   :  { %712 = vmatmul.mubr.f32.gmra.mrb[12].mxu0 %v288_v27  ;;  %v1068_v27 = vsel %vm1046_vm7, %v1064_v55, 0.0 }
  0x6d   :  { %717 = vmatprep.mubr.f32.mxu0 %v2594_v3  ;;  %v2366_v37 = vadd.f32 %v1068_v27, %v1026_v26 }
  0x70   :  { %721 = vmatmul.mubr.f32.gmra.mrb[14].mxu0 %v299_v36 }
  0x71   :  { %803 = vmatprep.mubr.f32.mxu0 %v2594_v3 }
  0x74   :  { %805 = vmatmul.mubr.f32.vlgmr.msra.gmra.mrb[0].mxu0 %v2052_v17 }
  0x75   :  { %1794 = vmatpush1.bf16.msra.mxu0 %v2117_v12  ;;  %810 = vmatprep.mubr.f32.mxu0 %v2594_v3 }
  0x78   :  { %812 = vmatmul.mubr.f32.gmra.mrb[2].mxu0 %v2079_v39 }
  0x79   :  { %817 = vmatprep.mubr.f32.mxu0 %v2594_v3 }
  0x7c   :  { %819 = vmatmul.mubr.f32.gmra.mrb[4].mxu0 %v2093_v57 }
  0x7d   :  { %824 = vmatprep.mubr.f32.mxu0 %v2594_v3 }
  0x80   :  { %826 = vmatmul.mubr.f32.gmra.mrb[6].mxu0 %v2119_v14 }
  0x81   :  { %831 = vmatprep.mubr.f32.mxu0 %v2594_v3 }
  0x84   :  { %833 = vmatmul.mubr.f32.gmra.mrb[8].mxu0 %v2149_v34 }
  0x85   :  { %838 = vmatprep.mubr.f32.mxu0 %v2594_v3 }
  0x88   :  { %840 = vmatmul.mubr.f32.gmra.mrb[10].mxu0 %v2165_v50 }
  0x89   :  { %845 = vmatprep.mubr.f32.mxu0 %v2594_v3 }
  0x8c   :  { %847 = vmatmul.mubr.f32.gmra.mrb[12].mxu0 %v2182_v59 }
  0x8d   :  { %852 = vmatprep.mubr.f32.mxu0 %v2594_v3 }
  0x90   :  { %854 = vmatmul.mubr.f32.gmra.mrb[14].mxu0 %v2196_v21 }
  0x91   :  { %928 = vmatprep.mubr.f32.mxu0 %v2594_v3 }
  0x94   :  { %930 = vmatmul.mubr.f32.vlgmr.msra.gmra.mrb[0].mxu0 %v2052_v17 }
  0x95   :  { %935 = vmatprep.mubr.f32.mxu0 %v2594_v3 }
  0x98   :  { %937 = vmatmul.mubr.f32.gmra.mrb[2].mxu0 %v2079_v39 }
  0x99   :  { %942 = vmatprep.mubr.f32.mxu0 %v2594_v3 }
  0x9c   :  { %944 = vmatmul.mubr.f32.gmra.mrb[4].mxu0 %v2093_v57 }
  0x9d   :  { %949 = vmatprep.mubr.f32.mxu0 %v2594_v3 }
  0xa0   :  { %951 = vmatmul.mubr.f32.gmra.mrb[6].mxu0 %v2119_v14 }
  0xa1   :  { %956 = vmatprep.mubr.f32.mxu0 %v2594_v3 }
  0xa4   :  { %958 = vmatmul.mubr.f32.gmra.mrb[8].mxu0 %v2149_v34  ;;  %v988_v34 = vrot.slane %v2047_v15, %v987_v25  ;;  %v1018_v15 = vrot.slane %v1008_v47, %v987_v25 }
  0xa5   :  { %963 = vmatprep.mubr.f32.mxu0 %v2594_v3 }
  0xa6   :  { %v996_v49 = vrot.slane %v988_v34, %v987_v25 }
  0xa8   :  { %965 = vmatmul.mubr.f32.gmra.mrb[10].mxu0 %v2165_v50  ;;  %v1038_v50 = vrot.slane %v1030_v40, %v987_v25  ;;  %vm1001_vm14 = vcmp.eq.s32.totalorder %v2034_v5, %v996_v49  ;;  %vm1003_vm4 = vcmp.eq.s32.totalorder %v2050_v16, %v996_v49 }
  0xa9   :  { %970 = vmatprep.mubr.f32.mxu0 %v2594_v3  ;;  %v1023_v20 = vsel %vm1001_vm14, %v1018_v15, 0.0  ;;  %v1025_v0 = vsel %vm1003_vm4, %v1018_v15, 0.0 }
  0xaa   :  { %vm1043_vm15 = vcmp.eq.s32.totalorder %v2034_v5, %v1038_v50  ;;  %vm1045_vm5 = vcmp.eq.s32.totalorder %v2050_v16, %v1038_v50  ;;  %v1100_v5 = vsel %vm1098_vm3, %v2347_v13, 0 }
  0xab   :  { %v1065_v56 = vsel %vm1043_vm15, %v1060_v28, 0.0  ;;  %v1067_v4 = vsel %vm1045_vm5, %v1060_v28, 0.0  ;;  %v2360_v31 = vsub.f32 %v1100_v5, %v1100_v5 }
  0xac   :  { %972 = vmatmul.mubr.f32.gmra.mrb[12].mxu0 %v2182_v59  ;;  %v1066_v59 = vsel %vm1044_vm2, %v1064_v55, 0.0  ;;  %v2353_v60 = vadd.f32 %v1065_v56, %v1023_v20  ;;  %v2363_v32 = vadd.f32 %v1067_v4, %v1025_v0 }
  0xad   :  { %977 = vmatprep.mubr.f32.mxu0 %v2594_v3  ;;  %v2357_v63 = vadd.f32 %v1066_v59, %v1024_v58 }
  0xb0   :  { %979 = vmatmul.mubr.f32.gmra.mrb[14].mxu0 %v2196_v21 }
  0xf3   :  { %v226_v17 = vpop.f32.mrb[0].mxu1 }
  0xf4   :  { %v2299_v23 = vpop.f32.mrb[1].mxu1 }
  0xf7   :  { %v2301_v39 = vpop.f32.mrb[2].mxu1 }
  0xf8   :  { %v2303_v44 = vpop.f32.mrb[3].mxu1 }
  0xfb   :  { %v2305_v57 = vpop.f32.mrb[4].mxu1 }
  0xfc   :  { %v2307_v61 = vpop.f32.mrb[5].mxu1 }
 0x113   :  { %v2309_v2 = vpop.f32.mrb[6].mxu1 }
 0x114   :  { %v2311_v8 = vpop.f32.mrb[7].mxu1 }
 0x117   :  { %v2313_v9 = vpop.f32.mrb[8].mxu1 }
 0x118   :  { %v2315_v10 = vpop.f32.mrb[9].mxu1 }
 0x11b   :  { %v2317_v11 = vpop.f32.mrb[10].mxu1 }
 0x11c   :  { %v2319_v12 = vpop.f32.mrb[11].mxu1 }
 0x11f   :  { %v2321_v14 = vpop.f32.mrb[12].mxu1 }
 0x120   :  { %v2323_v18 = vpop.f32.mrb[13].mxu1 }
 0x123   :  { %v2325_v19 = vpop.f32.mrb[14].mxu1 }
 0x124   :  { %v2327_v24 = vpop.f32.mrb[15].mxu1 }
 0x167   :  { %v931_v62 = vpop.f32.mrb[0].mxu0 }
 0x168   :  { %v1893_v21 = vadd.f32 %v931_v62, %v226_v17  ;;  %v933_v22 = vpop.f32.mrb[1].mxu0 }
 0x169   :  { %v1894_v29 = vadd.f32 %v933_v22, %v2299_v23  ;;  %v2593_v23 = vand.u32 4294901760, %v2360_v31 }
 0x16a   :  { %v1073_v16 = vmul.f32 %v1893_v21, %v2353_v60 }
 0x16b   :  { %v1074_v35 = vmul.f32 %v1894_v29, %v2357_v63  ;;  %v938_v36 = vpop.f32.mrb[2].mxu0  ;;  %v2384_v48 = vsub.f32 %v2360_v31, %v2593_v23 }
 0x16c   :  { %v1104_v38 = vand.u32 4294901760, %v1073_v16  ;;  %v1895_v6 = vadd.f32 %v938_v36, %v2301_v39  ;;  %v940_v7 = vpop.f32.mrb[3].mxu0 }
 0x16d   :  { %v1102_v17 = vand.u32 4294901760, %v1074_v35  ;;  %v1896_v25 = vadd.f32 %v940_v7, %v2303_v44  ;;  %v1187_v23 = vand.u32 4294901760, %v2384_v48 }
 0x16e   :  { %v2371_v30 = vsub.f32 %v1073_v16, %v1104_v38  ;;  %v1075_v33 = vmul.f32 %v1895_v6, %v2363_v32 }
 0x16f   :  { %v2374_v34 = vsub.f32 %v1074_v35, %v1102_v17  ;;  %v1076_v40 = vmul.f32 %v1896_v25, %v2366_v37  ;;  %v945_v41 = vpop.f32.mrb[4].mxu0 }
 0x170   :  { %v1202_v42 = vand.u32 4294901760, %v2371_v30  ;;  %v1108_v43 = vand.u32 4294901760, %v1075_v33  ;;  %v1897_v39 = vadd.f32 %v945_v41, %v2305_v57  ;;  %v947_v45 = vpop.f32.mrb[5].mxu0 }
 0x171   :  { %v1106_v46 = vand.u32 4294901760, %v1076_v40  ;;  %v1898_v44 = vadd.f32 %v947_v45, %v2307_v61  ;;  %v1196_v47 = vand.u32 4294901760, %v2374_v34 }
 0x172   :  { %v1203_v49 = vsub.f32 %v2371_v30, %v1202_v42  ;;  %v2389_v50 = vpack.c.bf16 %v1108_v43, %v1104_v38  ;;  %v2391_v51 = vsub.f32 %v1075_v33, %v1108_v43  ;;  %v1077_v57 = vmul.f32 %v1897_v39, %v2353_v60 }
 0x173   :  { %v2394_v52 = vsub.f32 %v1076_v40, %v1106_v46  ;;  %v1078_v61 = vmul.f32 %v1898_v44, %v2357_v63  ;;  %v952_v53 = vpop.f32.mrb[6].mxu0  ;;  %v2397_v54 = vpack.c.bf16 %v1106_v46, %v1102_v17  ;;  %v1197_v15 = vsub.f32 %v2374_v34, %v1196_v47 }
 0x174   :  { %v1214_v28 = vand.u32 4294901760, %v2391_v51  ;;  %v1112_v1 = vand.u32 4294901760, %v1077_v57  ;;  %v1899_v55 = vadd.f32 %v952_v53, %v2309_v2  ;;  %v954_v20 = vpop.f32.mrb[7].mxu0  ;;  %v1204_v56 = vand.u32 4294901760, %v1203_v49 }
 0x175   :  { %v1110_v58 = vand.u32 4294901760, %v1078_v61  ;;  %v1900_v59 = vadd.f32 %v954_v20, %v2311_v8  ;;  %1796 = vmatprep.subr.bf16.mxu1 %v2397_v54  ;;  %v1198_v5 = vand.u32 4294901760, %v1197_v15  ;;  %v1208_v62 = vand.u32 4294901760, %v2394_v52 }
 0x176   :  { %v1215_v0 = vsub.f32 %v2391_v51, %v1214_v28  ;;  %v2410_v4 = vsub.f32 %v1077_v57, %v1112_v1  ;;  %v1079_v21 = vmul.f32 %v1899_v55, %v2363_v32  ;;  %1798 = vmatpush1.bf16.msra.mxu1 %v2389_v50 }
 0x177   :  { %v2416_v22 = vsub.f32 %v1078_v61, %v1110_v58  ;;  %v1080_v8 = vmul.f32 %v1900_v59, %v2366_v37  ;;  %v959_v26 = vpop.f32.mrb[8].mxu0  ;;  %v1209_v27 = vsub.f32 %v2394_v52, %v1208_v62 }
 0x178   :  { %v1226_v16 = vand.u32 4294901760, %v2410_v4  ;;  %v1116_v35 = vand.u32 4294901760, %v1079_v21  ;;  %v1901_v36 = vadd.f32 %v959_v26, %v2313_v9  ;;  %v961_v38 = vpop.f32.mrb[9].mxu0  ;;  %v1216_v6 = vand.u32 4294901760, %v1215_v0 }
 0x179   :  { %v1114_v7 = vand.u32 4294901760, %v1080_v8  ;;  %v1902_v17 = vadd.f32 %v961_v38, %v2315_v10  ;;  %v1210_v25 = vand.u32 4294901760, %v1209_v27  ;;  %v1220_v33 = vand.u32 4294901760, %v2416_v22 }
 0x17a   :  { %v1227_v40 = vsub.f32 %v2410_v4, %v1226_v16  ;;  %v2431_v41 = vpack.c.bf16 %v1116_v35, %v1112_v1  ;;  %v2433_v43 = vsub.f32 %v1079_v21, %v1116_v35  ;;  %v1081_v39 = vmul.f32 %v1901_v36, %v2353_v60 }
 0x17b   :  { %v2436_v45 = vsub.f32 %v1080_v8, %v1114_v7  ;;  %v1082_v9 = vmul.f32 %v1902_v17, %v2357_v63  ;;  %v966_v46 = vpop.f32.mrb[10].mxu0  ;;  %v2439_v44 = vpack.c.bf16 %v1114_v7, %v1110_v58  ;;  %v2441_v10 = vpack.c.bf16 %v1210_v25, %v1198_v5 }
 0x17c   :  { %v1238_v49 = vand.u32 4294901760, %v2433_v43  ;;  %v1120_v57 = vand.u32 4294901760, %v1081_v39  ;;  %v1903_v61 = vadd.f32 %v966_v46, %v2317_v11  ;;  %v968_v53 = vpop.f32.mrb[11].mxu0  ;;  %v2445_v15 = vpack.c.bf16 %v1216_v6, %v1204_v56 }
 0x17d   :  { %v1118_v1 = vand.u32 4294901760, %v1082_v9  ;;  %v1904_v55 = vadd.f32 %v968_v53, %v2319_v12  ;;  %1800 = vmatprep.subr.bf16.mxu1 %v2439_v44  ;;  %v1221_v20 = vsub.f32 %v2416_v22, %v1220_v33  ;;  %v1232_v58 = vand.u32 4294901760, %v2436_v45 }
 0x17e   :  { %v1239_v59 = vsub.f32 %v2433_v43, %v1238_v49  ;;  %v2456_v5 = vsub.f32 %v1081_v39, %v1120_v57  ;;  %v1083_v11 = vmul.f32 %v1903_v61, %v2363_v32  ;;  %1802 = vmatpush1.bf16.msra.mxu1 %v2431_v41  ;;  %v1228_v56 = vand.u32 4294901760, %v1227_v40 }
 0x17f   :  { %v2460_v12 = vsub.f32 %v1082_v9, %v1118_v1  ;;  %v1084_v0 = vmul.f32 %v1904_v55, %v2366_v37  ;;  %v973_v21 = vpop.f32.mrb[12].mxu0  ;;  %v1222_v8 = vand.u32 4294901760, %v1221_v20  ;;  %v1233_v26 = vsub.f32 %v2436_v45, %v1232_v58 }
 0x180   :  { %v1250_v27 = vand.u32 4294901760, %v2456_v5  ;;  %v1124_v35 = vand.u32 4294901760, %v1083_v11  ;;  %v1905_v36 = vadd.f32 %v973_v21, %v2321_v14  ;;  %v975_v38 = vpop.f32.mrb[13].mxu0  ;;  %v1240_v6 = vand.u32 4294901760, %v1239_v59 }
 0x181   :  { %v1122_v7 = vand.u32 4294901760, %v1084_v0  ;;  %v1906_v17 = vadd.f32 %v975_v38, %v2323_v18  ;;  %v1234_v25 = vand.u32 4294901760, %v1233_v26  ;;  %v1244_v40 = vand.u32 4294901760, %v2460_v12 }
 0x182   :  { %v1251_v39 = vsub.f32 %v2456_v5, %v1250_v27  ;;  %v2473_v9 = vpack.c.bf16 %v1124_v35, %v1120_v57  ;;  %v2475_v46 = vsub.f32 %v1083_v11, %v1124_v35  ;;  %v1085_v61 = vmul.f32 %v1905_v36, %v2353_v60 }
 0x183   :  { %v2478_v53 = vsub.f32 %v1084_v0, %v1122_v7  ;;  %v1086_v14 = vmul.f32 %v1906_v17, %v2357_v63  ;;  %v980_v55 = vpop.f32.mrb[14].mxu0  ;;  %v2481_v20 = vpack.c.bf16 %v1122_v7, %v1118_v1  ;;  %v2483_v18 = vpack.c.bf16 %v1234_v25, %v1222_v8 }
 0x184   :  { %v1262_v59 = vand.u32 4294901760, %v2475_v46  ;;  %v1128_v21 = vand.u32 4294901760, %v1085_v61  ;;  %v1907_v26 = vadd.f32 %v980_v55, %v2325_v19  ;;  %v982_v57 = vpop.f32.mrb[15].mxu0  ;;  %v1817_v38 = vpack.c.bf16 %v1240_v6, %v1228_v56 }
 0x185   :  { %v1126_v11 = vand.u32 4294901760, %v1086_v14  ;;  %v1908_v35 = vadd.f32 %v982_v57, %v2327_v24  ;;  %1804 = vmatprep.subr.bf16.mxu1 %v2481_v20  ;;  %v1245_v60 = vsub.f32 %v2460_v12, %v1244_v40  ;;  %v1256_v63 = vand.u32 4294901760, %v2478_v53 }
 0x186   :  { %v1263_v1 = vsub.f32 %v2475_v46, %v1262_v59  ;;  %v2492_v0 = vsub.f32 %v1085_v61, %v1128_v21  ;;  %v1087_v8 = vmul.f32 %v1907_v26, %v2363_v32  ;;  %1806 = vmatpush1.bf16.msra.mxu1 %v2473_v9  ;;  %v1252_v19 = vand.u32 4294901760, %v1251_v39 }
 0x187   :  { %v2496_v36 = vsub.f32 %v1086_v14, %v1126_v11  ;;  %v1088_v56 = vmul.f32 %v1908_v35, %v2366_v37  ;;  %v1246_v24 = vand.u32 4294901760, %v1245_v60  ;;  %v1257_v6 = vsub.f32 %v2478_v53, %v1256_v63 }
 0x188   :  { %v1274_v7 = vand.u32 4294901760, %v2492_v0  ;;  %v1132_v17 = vand.u32 4294901760, %v1087_v8  ;;  %v1264_v25 = vand.u32 4294901760, %v1263_v1  ;;  %v1831_v61 = vpack.c.bf16 %v2436_v45, %v2416_v22 }
 0x189   :  { %v1130_v55 = vand.u32 4294901760, %v1088_v56  ;;  %v1258_v57 = vand.u32 4294901760, %v1257_v6  ;;  %v1268_v32 = vand.u32 4294901760, %v2496_v36  ;;  %v1833_v39 = vpack.c.bf16 %v2433_v43, %v2410_v4 }
 0x18a   :  { %v2506_v14 = vpack.c.bf16 %v1132_v17, %v1128_v21  ;;  %v1285_v37 = vsub.f32 %v1087_v8, %v1132_v17  ;;  %v1821_v26 = vpack.c.bf16 %v1264_v25, %v1252_v19  ;;  %v1275_v29 = vsub.f32 %v2492_v0, %v1274_v7 }
 0x18b   :  { %v1279_v35 = vsub.f32 %v1088_v56, %v1130_v55  ;;  %v2508_v60 = vpack.c.bf16 %v1130_v55, %v1126_v11  ;;  %v1819_v1 = vpack.c.bf16 %v1258_v57, %v1246_v24  ;;  %v1835_v6 = vpack.c.bf16 %v2478_v53, %v2460_v12 }
 0x18c   :  { %v1286_v2 = vand.u32 4294901760, %v1285_v37  ;;  %v1837_v3 = vpack.c.bf16 %v2475_v46, %v2456_v5  ;;  %v1269_v21 = vsub.f32 %v2496_v36, %v1268_v32  ;;  %v1841_v19 = vpack.c.bf16 %v1285_v37, %v2492_v0 }
 0x18d   :  { %1808 = vmatprep.subr.bf16.mxu1 %v2508_v60  ;;  %v1280_v8 = vand.u32 4294901760, %v1279_v35  ;;  %v1839_v11 = vpack.c.bf16 %v1279_v35, %v2496_v36  ;;  %v1859_v12 = vpack.c.bf16 %v1208_v62, %v1196_v47  ;;  %v1861_v46 = vpack.c.bf16 %v1214_v28, %v1202_v42 }
 0x18e   :  { %v1287_v48 = vsub.f32 %v1285_v37, %v1286_v2  ;;  %1810 = vmatpush1.bf16.msra.mxu1 %v2506_v14  ;;  %v1863_v53 = vpack.c.bf16 %v1232_v58, %v1220_v33  ;;  %v1865_v36 = vpack.c.bf16 %v1238_v49, %v1226_v16  ;;  %v1867_v56 = vpack.c.bf16 %v1256_v63, %v1244_v40 }
 0x18f   :  { %1812 = vmatprep.subr.bf16.mxu1 %v2441_v10  ;;  %v1281_v0 = vsub.f32 %v1279_v35, %v1280_v8  ;;  %v1869_v47 = vpack.c.bf16 %v1262_v59, %v1250_v27  ;;  %v1276_v62 = vand.u32 4294901760, %v1275_v29  ;;  %v1871_v42 = vpack.c.bf16 %v1280_v8, %v1268_v32 }
 0x190   :  { %v1288_v24 = vand.u32 4294901760, %v1287_v48  ;;  %v1873_v28 = vpack.c.bf16 %v1286_v2, %v1274_v7  ;;  %v1270_v22 = vand.u32 4294901760, %v1269_v21  ;;  %v2596_v10 = vmov 0.0  }
 0x191   :  { %1188 = vmatmul.mubr.f32.vlgmr.msra.gmra.mrb[16].mxu1 %v1187_v23  ;;  %v1282_v45 = vand.u32 4294901760, %v1281_v0  ;;  %v2597_v29 = vpack.c.bf16 %v2394_v52, %v2374_v34  ;;  %v2598_v23 = vpack.c.bf16 %v2391_v51, %v2371_v30 }
 0x192   :  { %1814 = vmatpush1.bf16.msra.mxu1 %v2445_v15  ;;  %v1825_v33 = vpack.c.bf16 %v1288_v24, %v1276_v62  ;;  %1338 = vmatprep.mubr.f32.mxu1 %v2596_v10 }
 0x193   :  { %1816 = vmatprep.subr.bf16.mxu1 %v2483_v18  ;;  %v1823_v4 = vpack.c.bf16 %v1282_v45, %v1270_v22 }
 0x196   :  { %1818 = vmatpush1.bf16.msra.mxu1 %v1817_v38 }
 0x197   :  { %1820 = vmatprep.subr.bf16.mxu1 %v1819_v1 }
 0x19a   :  { %1822 = vmatpush1.bf16.msra.mxu1 %v1821_v26 }
 0x19b   :  { %1824 = vmatprep.subr.bf16.mxu1 %v1823_v4 }
 0x19e   :  { %1826 = vmatpush1.bf16.msra.mxu1 %v1825_v33 }
 0x19f   :  { %1828 = vmatprep.subr.bf16.mxu1 %v2597_v29 }
 0x1a1   :  { %1768 = vmatmul.mubr.msk.f32.vlgmr.msra.gmra.mrb[16].mxu1 %vm1098_vm3, %v2347_v13 }
 0x1a2   :  { %1830 = vmatpush1.bf16.msra.mxu1 %v2598_v23  ;;  %1442 = vmatprep.mubr.f32.mxu1 %v2596_v10 }
 0x1a3   :  { %1832 = vmatprep.subr.bf16.mxu1 %v1831_v61 }
 0x1a6   :  { %1834 = vmatpush1.bf16.msra.mxu1 %v1833_v39 }
 0x1a7   :  { %1836 = vmatprep.subr.bf16.mxu1 %v1835_v6 }
 0x1aa   :  { %1838 = vmatpush1.bf16.msra.mxu1 %v1837_v3  ;;  %v2599_v3 = vand.u32 4294901760, %v2360_v31 }
 0x1ab   :  { %1840 = vmatprep.subr.bf16.mxu1 %v1839_v11 }
 0x1ae   :  { %1842 = vmatpush1.bf16.msra.mxu1 %v1841_v19 }
 0x1af   :  { %1844 = vmatprep.subr.bf16.mxu1 %v2397_v54 }
 0x1b1   :  { %1445 = vmatmul.mubr.f32.vlgmr.msra.gmra.mrb[16].mxu1 %v2360_v31 }
 0x1b2   :  { %1846 = vmatpush1.bf16.msra.mxu1 %v2389_v50  ;;  %1531 = vmatprep.mubr.f32.mxu1 %v2596_v10 }
 0x1b3   :  { %1848 = vmatprep.subr.bf16.mxu1 %v2439_v44 }
 0x1b6   :  { %1850 = vmatpush1.bf16.msra.mxu1 %v2431_v41 }
 0x1b7   :  { %1852 = vmatprep.subr.bf16.mxu1 %v2481_v20 }
 0x1ba   :  { %1854 = vmatpush1.bf16.msra.mxu1 %v2473_v9 }
 0x1bb   :  { %1856 = vmatprep.subr.bf16.mxu1 %v2508_v60 }
 0x1be   :  { %1858 = vmatpush1.bf16.msra.mxu1 %v2506_v14 }
 0x1bf   :  { %1860 = vmatprep.subr.bf16.mxu1 %v1859_v12 }
 0x1c1   :  { %1535 = vmatmul.mubr.f32.vlgmr.msra.gmra.mrb[16].mxu1 %v2599_v3 }
 0x1c2   :  { %1862 = vmatpush1.bf16.msra.mxu1 %v1861_v46  ;;  %1653 = vmatprep.mubr.f32.mxu1 %v2596_v10 }
 0x1c3   :  { %1864 = vmatprep.subr.bf16.mxu1 %v1863_v53 }
 0x1c6   :  { %1866 = vmatpush1.bf16.msra.mxu1 %v1865_v36 }
 0x1c7   :  { %1868 = vmatprep.subr.bf16.mxu1 %v1867_v56 }
 0x1ca   :  { %1870 = vmatpush1.bf16.msra.mxu1 %v1869_v47 }
 0x1cb   :  { %1872 = vmatprep.subr.bf16.mxu1 %v1871_v42 }
 0x1ce   :  { %1874 = vmatpush1.bf16.msra.mxu1 %v1873_v28 }
 0x1cf   :  { %1876 = vmatprep.subr.bf16.mxu1 %v2397_v54 }
 0x1d1   :  { %1769 = vmatmul.mubr.msk.f32.vlgmr.msra.gmra.mrb[16].mxu1 %vm1098_vm3, %v2347_v13 }
 0x1d2   :  { %1878 = vmatpush1.bf16.msra.mxu1 %v2389_v50  ;;  %1741 = vmatprep.mubr.f32.mxu1 %v2596_v10 }
 0x1d3   :  { %1880 = vmatprep.subr.bf16.mxu1 %v2439_v44 }
 0x1d6   :  { %1882 = vmatpush1.bf16.msra.mxu1 %v2431_v41 }
 0x1d7   :  { %1884 = vmatprep.subr.bf16.mxu1 %v2481_v20 }
 0x1da   :  { %1886 = vmatpush1.bf16.msra.mxu1 %v2473_v9 }
 0x1db   :  { %1888 = vmatprep.subr.bf16.mxu1 %v2508_v60 }
 0x1de   :  { %1890 = vmatpush1.bf16.msra.mxu1 %v2506_v14 }
 0x1e1   :  { %1770 = vmatmul.mubr.msk.f32.vlgmr.msra.gmra.mrb[16].mxu1 %vm1098_vm3, %v2347_v13 }
 0x2b4   :  { %v1744_v31 = vpop.f32.mrb[16].mxu1 }
 0x2b5   :  { %v1746_v30 = vpop.f32.mrb[17].mxu1 }
 0x2b6   :  { %v1751_v34 = vcombine.low %v1744_v31, %v1746_v30 }
 0x2b8   :  { %1753 = vst [vmem:[#allocation2] sm:$0xff] %v1751_v34 }
 0x2b9   :  { %1998 = shalt.err (!%p1995_p4)
}
 0x2ba   :  { %s1999_s30 = scalar_lea.hbm %s2592_s2, 128 }
 0x2bb   :  { %p2000_p5 = scmp.ne.s32.totalorder %s2592_s2, %s1999_s30  ;;  %p2003_p6 = scmp.lt.u32.totalorder %s1999_s30, %s2592_s2 }
 0x2bd   :  { %p2005_p7 = pnand %p2003_p6, %p2000_p5 }
 0x2bf   :  { %2008 = shalt.err (!%p2005_p7)
}
 0x2c0   :  { %1763 = dma.vmem_to_hbm [thread:$0]  %s1761_s26, 128, %s2592_s2, [#allocation3]  }
 0x2c1   :  { %2009 = dma.done.wait [#allocation3], 128  }
 0x2c2   :  { %2010 = vsyncadd [#allocation3], 4294967168 }
 0x2c3   :  { %1767 = vsyncpa [#allocation3], 1 }

</bundles_post_ra>
